<compile_context>
chip_gen: v6e
topology: v6e:2x2x1
jax: 0.10.0
libtpu: 0.0.40
codegen_flags: <defaults>
</compile_context>

<pallas_src>
import jax
import jax.numpy as jnp
from jax.experimental import pallas as pl
from jax.experimental.pallas import tpu as pltpu


def _emb_kernel(ids_ref, emb_ref, w_ref, out_ref):
    """Fused per batch tile: one-hot row select from the VMEM-resident table,
    h = tanh(rows @ W), row-wise L2 normalize."""
    ids = ids_ref[...]                                   # (TB, 1) int32
    tb = ids.shape[0]
    vp = emb_ref.shape[0]

    # Exact one-hot row selection on the MXU (selects bf16 table values exactly;
    # avoids relying on in-kernel gather lowering; row traffic stays in VMEM).
    onehot = (jax.lax.broadcasted_iota(jnp.int32, (tb, vp), 1) == ids).astype(emb_ref.dtype)
    rows = jnp.dot(onehot, emb_ref[...],
                   preferred_element_type=jnp.float32)   # (TB, H) exact bf16 values in f32

    # bf16 operands into the MXU, f32 accumulate; tanh on the EUP in f32.
    h = jnp.tanh(jnp.dot(rows.astype(w_ref.dtype), w_ref[...],
                         preferred_element_type=jnp.float32))        # (TB, H)

    # F.normalize(p=2, dim=1, eps=1e-12): x / max(||x||, 1e-12)
    #   == x * rsqrt(max(sumsq, 1e-24))  -> EUP rsqrt, no VPU divide.
    sumsq = jnp.sum(h * h, axis=1, keepdims=True)        # (TB, 1)
    inv = jax.lax.rsqrt(jnp.maximum(sumsq, jnp.float32(1e-24)))
    out_ref[...] = (h * inv).astype(out_ref.dtype)


def _round_up(x, m):
    return (x + m - 1) // m * m


def emb_model_forward(input_ids, emb_table, w, pad_token):
    """JAX equivalent of EmbModel.forward(input_ids) with the synthetic base model."""
    B = len(input_ids)
    V, H = emb_table.shape

    # Gather-first: only the last real token id matters.  Empty sequence:
    # PyTorch's hidden[i, len-1] == hidden[i, -1] hits the padded position, so
    # pad_token is used there as well.
    last_tok = [int(seq[-1]) if len(seq) > 0 else int(pad_token) for seq in input_ids]

    # Bucket the padded batch to powers of two (>=16): avoids a recompile per
    # ragged batch size, guarantees >=2 grid steps (both v7x TCs used), and the
    # tile cap of 1024 rows keeps per-grid-step overhead negligible.
    Bp = max(16, pl.next_power_of_2(max(B, 1)))
    TB = min(1024, Bp // 2)                      # multiple of 8, divides Bp

    ids = jnp.array(last_tok + [int(pad_token)] * (Bp - B),
                    dtype=jnp.int32).reshape(Bp, 1)

    # Pad vocab rows to a lane-friendly multiple of 128 (zero rows, never
    # selected) and cast operands to bf16: halves table/W HBM traffic and feeds
    # the MXU its native bf16 path.  All post-matmul math stays f32.
    Vp = _round_up(V, 128)
    emb_bf16 = jnp.zeros((Vp, H), jnp.bfloat16).at[:V].set(emb_table.astype(jnp.bfloat16))
    w_bf16 = w.astype(jnp.bfloat16)
    # TODO(synk): for a large vocab (table won't fit VMEM), pass emb_table with
    # memory_space=pl.ANY and DMA-gather the TB rows per tile instead of the
    # resident-table one-hot select used here.

    # Explicit VMEM budget: double-buffered ids/output blocks + resident table
    # and W + f32 intermediates, capped well below v7x's 64 MiB physical VMEM
    # (v5e's default scoped limit is only 16 MiB).
    est = (2 * (TB * 4 + TB * H * 4)            # ids + output blocks (double-buffered)
           + 2 * (Vp * H * 2 + H * H * 2)       # table + W (bf16)
           + (TB * Vp * 2 + 2 * TB * H * 4))    # onehot + f32 intermediates
    vmem_limit = min(max(est + (2 << 20), 8 << 20), 48 << 20)

    out = pl.pallas_call(
        _emb_kernel,
        out_shape=jax.ShapeDtypeStruct((Bp, H), jnp.float32),
        grid=(Bp // TB,),
        in_specs=[
            pl.BlockSpec((TB, 1), lambda i: (i, 0)),   # last-token ids, per batch tile
            pl.BlockSpec((Vp, H), lambda i: (0, 0)),   # whole padded table, VMEM-resident
            pl.BlockSpec((H, H), lambda i: (0, 0)),    # W, resident (constant index_map => no re-DMA)
        ],
        out_specs=pl.BlockSpec((TB, H), lambda i: (i, 0)),
        compiler_params=pltpu.CompilerParams(
            dimension_semantics=("parallel",),         # megacore-splittable (grid >= 2)
            vmem_limit_bytes=vmem_limit,
        ),
    )(ids, emb_bf16, w_bf16)
    return out[:B]


def _reference_forward(input_ids, emb_table, w, pad_token):
    """Pure-JAX reference mirroring the PyTorch module line by line."""
    max_len = max((len(t) for t in input_ids), default=0)
    batch = jnp.array(
        [t + [pad_token] * (max_len - len(t)) for t in input_ids], dtype=jnp.int32
    )
    hidden = jnp.tanh(emb_table[batch].astype(jnp.float32) @ w)   # (B, L, H)
    rows = jnp.stack(
        [hidden[i, len(input_ids[i]) - 1, :] for i in range(hidden.shape[0])]
    )
    norms = jnp.maximum(
        jnp.sqrt(jnp.sum(rows * rows, axis=1, keepdims=True)), 1e-12
    )
    return rows / norms


if __name__ == "__main__":
    VOCAB, H = 32, 128
    pad_token = 0

    key = jax.random.PRNGKey(0)
    k_emb, k_w = jax.random.split(key)
    emb_table = jax.random.normal(k_emb, (VOCAB, H), dtype=jnp.float32) * 0.1
    w = jax.random.normal(k_w, (H, H), dtype=jnp.float32) * 0.1

    # Deterministic ragged batch of token ids (batch=2, max_len=8).
    input_ids = [
        [3, 7, 11, 19, 2],                 # length 5
        [5, 1, 9, 13, 21, 8, 30, 4],       # length 8
    ]

    out = emb_model_forward(input_ids, emb_table, w, pad_token)
    out = jax.block_until_ready(out)
    assert out.shape == (len(input_ids), H)

    # Tight check against a reference using the same bf16-rounded operands
    # (kernel accumulates in f32, so only summation order differs).
    ref_bf16 = _reference_forward(
        input_ids,
        emb_table.astype(jnp.bfloat16).astype(jnp.float32),
        w.astype(jnp.bfloat16).astype(jnp.float32),
        pad_token,
    )
    assert jnp.allclose(out, ref_bf16, atol=1e-3, rtol=1e-3), "mismatch vs bf16-consistent reference"

    # Loose check against the full-f32 module semantics (bf16 operand rounding).
    ref_f32 = _reference_forward(input_ids, emb_table, w, pad_token)
    assert jnp.allclose(out, ref_f32, atol=2e-2, rtol=2e-2), "mismatch vs f32 reference"

    print("KERNEL_OK")
</pallas_src>

<mosaic_0001>
module attributes {stable_mosaic.version = 11 : i64} {
  func.func @_emb_kernel(%arg0: i32, %arg1: memref<8x1xi32, #tpu.memory_space<vmem>>, %arg2: memref<128x128xbf16, #tpu.memory_space<vmem>>, %arg3: memref<128x128xbf16, #tpu.memory_space<vmem>>, %arg4: memref<8x128xf32, #tpu.memory_space<vmem>>) attributes {dimension_semantics = [#tpu.dimension_semantics<parallel>], iteration_bounds = array<i64: 2>, scalar_prefetch = 0 : i64, scratch_operands = 0 : i64, tpu.core_type = #tpu.core_type<tc>, window_params = [{transform_indices = @transform_0, window_bounds = array<i64: 8, 1>}, {pipeline_mode = #tpu.pipeline_mode<synchronous>, transform_indices = @transform_1, window_bounds = array<i64: 128, 128>}, {pipeline_mode = #tpu.pipeline_mode<synchronous>, transform_indices = @transform_2, window_bounds = array<i64: 128, 128>}, {transform_indices = @transform_3, window_bounds = array<i64: 8, 128>}]} {
    %c0 = arith.constant 0 : index
    %c0_0 = arith.constant 0 : index
    %0 = vector.load %arg1[%c0, %c0_0] : memref<8x1xi32, #tpu.memory_space<vmem>>, vector<8x1xi32>
    %1 = tpu.iota {dimensions = array<i32: 1>} : vector<8x128xi32>
    %2 = vector.broadcast %0 : vector<8x1xi32> to vector<8x128xi32>
    %3 = arith.cmpi eq, %1, %2 : vector<8x128xi32>
    %4 = arith.extui %3 : vector<8x128xi1> to vector<8x128xi32>
    %5 = arith.sitofp %4 : vector<8x128xi32> to vector<8x128xf32>
    %6 = arith.truncf %5 : vector<8x128xf32> to vector<8x128xbf16>
    %c0_1 = arith.constant 0 : index
    %c0_2 = arith.constant 0 : index
    %7 = vector.load %arg2[%c0_1, %c0_2] : memref<128x128xbf16, #tpu.memory_space<vmem>>, vector<128x128xbf16>
    %cst = arith.constant dense<0.000000e+00> : vector<8x128xf32>
    %8 = tpu.matmul %6, %7, %cst {dimension_numbers = #tpu.dot_dimension_numbers<[1], [0], [0], [1], [0, 0, 1, 1], [], []>} : vector<8x128xbf16>, vector<128x128xbf16>, vector<8x128xf32> -> vector<8x128xf32>
    %9 = arith.truncf %8 : vector<8x128xf32> to vector<8x128xbf16>
    %c0_3 = arith.constant 0 : index
    %c0_4 = arith.constant 0 : index
    %10 = vector.load %arg3[%c0_3, %c0_4] : memref<128x128xbf16, #tpu.memory_space<vmem>>, vector<128x128xbf16>
    %cst_5 = arith.constant dense<0.000000e+00> : vector<8x128xf32>
    %11 = tpu.matmul %9, %10, %cst_5 {dimension_numbers = #tpu.dot_dimension_numbers<[1], [0], [0], [1], [0, 0, 1, 1], [], []>} : vector<8x128xbf16>, vector<128x128xbf16>, vector<8x128xf32> -> vector<8x128xf32>
    %12 = math.tanh %11 : vector<8x128xf32>
    %13 = arith.mulf %12, %12 : vector<8x128xf32>
    %cst_6 = arith.constant dense<0.000000e+00> : vector<8xf32>
    %14 = vector.multi_reduction <add>, %13, %cst_6 [1] : vector<8x128xf32> to vector<8xf32>
    %15 = vector.shape_cast %14 : vector<8xf32> to vector<8x1xf32>
    %cst_7 = arith.constant 1.000000e-24 : f32
    %16 = vector.broadcast %cst_7 : f32 to vector<8x1xf32>
    %17 = arith.maximumf %15, %16 : vector<8x1xf32>
    %18 = math.rsqrt %17 : vector<8x1xf32>
    %19 = vector.broadcast %18 : vector<8x1xf32> to vector<8x128xf32>
    %20 = arith.mulf %12, %19 : vector<8x128xf32>
    %c0_8 = arith.constant 0 : index
    %c0_9 = arith.constant 0 : index
    %21 = vector.load %arg4[%c0_8, %c0_9] : memref<8x128xf32, #tpu.memory_space<vmem>>, vector<8x128xf32>
    tpu.vector_store %arg4[%c0_8, %c0_9], %20 {strides = array<i32>} : memref<8x128xf32, #tpu.memory_space<vmem>>, vector<8x128xf32>,
    return
  }
  func.func @transform_0(%arg0: i32) -> (i32, i32) {
    %c0_i32 = arith.constant 0 : i32
    %c0_i32_0 = arith.constant 0 : i32
    return %arg0, %c0_i32 : i32, i32
  }
  func.func @transform_1(%arg0: i32) -> (i32, i32) {
    %c0_i32 = arith.constant 0 : i32
    %c0_i32_0 = arith.constant 0 : i32
    %c0_i32_1 = arith.constant 0 : i32
    return %c0_i32, %c0_i32_0 : i32, i32
  }
  func.func @transform_2(%arg0: i32) -> (i32, i32) {
    %c0_i32 = arith.constant 0 : i32
    %c0_i32_0 = arith.constant 0 : i32
    %c0_i32_1 = arith.constant 0 : i32
    return %c0_i32, %c0_i32_0 : i32, i32
  }
  func.func @transform_3(%arg0: i32) -> (i32, i32) {
    %c0_i32 = arith.constant 0 : i32
    %c0_i32_0 = arith.constant 0 : i32
    return %arg0, %c0_i32 : i32, i32
  }
}

</mosaic_0001>

<bundles_post_ra>
// kernel: tpu_custom_call.1
= control target key start
LH: loop header
LB: loop body
LE: loop exit
PB: predicated region body
PF: predicated region fallthrough
CT: control target
= control target key end

     0   :  { %8 = vsyncpa [#allocation3], 0  ;;  %s976_s0 = inlined_call_operand.vmem [shape: s32[16,1], index: 0, kind: input, shape index: {}]   ;;  %s977_s1 = inlined_call_operand.hbm [shape: bf16[128,128], index: 1, kind: input, shape index: {}]   ;;  %s978_s2 = inlined_call_operand.hbm [shape: bf16[128,128], index: 2, kind: input, shape index: {}]   ;;  %s979_s3 = inlined_call_operand.hbm [shape: f32[16,128], index: 3, kind: output, shape index: {}]  }
   0x1   :  { %9 = vsyncpa [#allocation6], 0 }
   0x2   :  { %10 = vsyncpa [#allocation4], 0 }
   0x3   :  { %12 = vsyncpa [#allocation4 + $0x1], 0  ;;  %s848_s12 = smov 0   ;;  %s850_s13 = smov 0  }
   0x4   :  { %s852_s14 = smov 0   ;;  %s854_s15 = smov 0  }
   0x5 LB: > { %s869_s16 = sadd.s32 4294967295, %s817_s15   ;;  %s519_s17 = sadd.s32 4294967294, %s817_s15   ;;  %s817_s15 = sphi %s854_s15, %s993_s15   ;;  %s813_s14 = sphi %s852_s14, %s992_s14   ;;  %s809_s13 = sphi %s850_s13, %s991_s13   ;;  %s805_s12 = sphi %s848_s12, %s990_s12  }
   0x6   : > { %s873_s18 = sadd.s32 1, %s817_s15   ;;  %s93_s19 = sadd.s32 1, %s813_s14 }
   0x7   : > { %s90_s20 = ssub.s32 %s817_s15, %s873_s18  ;;  %p103_p0 = scmp.ne.s32.totalorder %s813_s14, %s809_s13 }
   0x8   : > { %p91_p1 = scmp.eq.s32.totalorder %s90_s20, 0  ;;  %p104_p2 = scmp.eq.s32.totalorder %s869_s16, 1 }
   0x9   : > { %p109_p3 = scmp.ne.s32.totalorder %s809_s13, %s805_s12  ;;  %p110_p4 = scmp.eq.s32.totalorder %s519_s17, 1 }
   0xa   : > { %s884_s21 = scalar_select %p91_p1, %s813_s14, %s93_s19  }
   0xb   : > { %p886_p5 = por %p104_p2, %p103_p0  ;;  %p890_p6 = por %p110_p4, %p109_p3 }
   0xc   : > { %p520_p7 = scmp.ge.s32.totalorder %s817_s15, 1  ;;  %p117_p8 = scmp.lt.s32.totalorder %s817_s15, 3 }
   0xd   : > { %s982_s23 = scalar_select %p890_p6, 1, 0 }
   0xe   : > { %p980_p9 = scmp.eq.s32.totalorder %s869_s16, 0  ;;  %p897_p10 = pnand %p520_p7, %p117_p8 }
   0xf   : > { %s819_s25 = smov [#allocation2]   ;;  %s820_s28 = smov [#allocation5]  }
  0x10   : > { %s129_s26 = sshll.u32 %s819_s25, 4  ;;  %p620_p11 = pneg %p897_p10  ;;  %s130_s26 = int_to_ptr.vmem [resolvable:$true] %s129_s26 }
  0x11   : > { %s142_s29 = sshll.u32 %s820_s28, 4  ;;  %s708_s30 = scalar_lea.vmem %s130_s26, 1024  ;;  %s143_s29 = int_to_ptr.vmem [resolvable:$true] %s142_s29 }
  0x12   : > { %p905_p12 = pnand %p980_p9, %p620_p11  ;;  %p709_p0 = scmp.ne.s32.totalorder %s130_s26, %s708_s30 }
  0x13   : > { %p716_p3 = scmp.lt.s32.totalorder %s130_s26, %s130_s26  ;;  %p717_p4 = scmp.lt.s32.totalorder %s708_s30, %s708_s30 }
  0x14   : > { %p699_p13 = pneg %p905_p12 }
  0x15   : > { %p718_p7 = por %p717_p4, %p716_p3 }
  0x16   : > { %p711_p1 = pnand %p709_p0, %p699_p13 }
  0x18   : > { %p712_p2 = pneg %p711_p1 }
  0x1a   : > { %p719_p8 = pnand %p718_p7, %p712_p2 }
  0x1c   : > { %722 = shalt.err (!%p719_p8)
}
  0x1d   : > { %s821_s4 = smov 64   ;;  %s822_s5 = smov 4  }
  0x1e   : > { %623 = dma.hbm_to_vmem [thread:$0]  (!%p905_p12), %s977_s1, 1024, %s130_s26, [#allocation3], %s821_s4, %s821_s4, %s822_s5  }
  0x1f   : > { %s734_s8 = scalar_lea.vmem %s143_s29, 1024  ;;  %p742_p9 = scmp.lt.s32.totalorder %s143_s29, %s143_s29 }
  0x20   : > { %p735_p11 = scmp.ne.s32.totalorder %s143_s29, %s734_s8  ;;  %p743_p6 = scmp.lt.s32.totalorder %s734_s8, %s734_s8 }
  0x22   : > { %p737_p0 = pnand %p735_p11, %p699_p13  ;;  %p744_p3 = por %p743_p6, %p742_p9 }
  0x24   : > { %p738_p1 = pneg %p737_p0 }
  0x26   : > { %p745_p2 = pnand %p744_p3, %p738_p1 }
  0x28   : > { %748 = shalt.err (!%p745_p2)
}
  0x29   : > { %626 = dma.hbm_to_vmem [thread:$0]  (!%p905_p12), %s978_s2, 1024, %s143_s29, [#allocation6], %s821_s4, %s821_s4, %s822_s5  }
  0x2a   : > { %165 = sbr.rel (%p897_p10) target bundleno = 757 (0x2f5), region = 32  ;;  %p985_p4 = scmp.eq.s32.totalorder (!%p897_p10), %s869_s16, 0 }
  0x2f   : > { %792 = dma.done.wait (%p985_p4), [#allocation3], 1024   ;;  %p986_p13 = pmov %p985_p4 }
  0x30   : > { %p987_p7 = pmov %p985_p4 }
  0x31   : > { %794 = vsyncadd (%p986_p13), [#allocation3], 4294966272 }
  0x32   : > { %796 = dma.done.wait (%p987_p7), [#allocation6], 1024   ;;  %p988_p6 = pmov %p985_p4 }
  0x33   : > { %p192_p9 = scmp.lt.s32.totalorder %s869_s16, 1  ;;  %v823_v0 = vmov 0   ;;  %v824_v1 = vmov 0.0   ;;  %vm825_vm0 = vmmov 0   ;;  %v677_v3 = vld [vmem:[#allocation2 + $0x38] sm:$0xff]   ;;  %v678_v4 = vld [vmem:[#allocation2 + $0x30] sm:$0xff]   ;;  %v198_v18 = vlaneseq }
  0x34   : > { %798 = vsyncadd (%p988_p6), [#allocation6], 4294966272  ;;  %676 = vset.pattern.permute.xlu0 %v823_v0  ;;  %570 = vmatprep.subr.bf16.mxu0 %v824_v1  ;;  %v679_v5 = vld [vmem:[#allocation2 + $0x28] sm:$0xff]   ;;  %v685_v6 = vld [vmem:[#allocation5 + $0x38] sm:$0xff]   ;;  %v826_v21 = vmov 1.0|1.0  }
  0x35   : > { %s193_s11 = scalar_select %p192_p9, %s869_s16, 1  ;;  %590 = vmatprep.subr.bf16.mxu1 %v824_v1  ;;  %586 = vmatprep.mubr.msk.bf16.mxu0 %vm825_vm0, %v824_v1  ;;  %v680_v7 = vld [vmem:[#allocation2 + $0x20] sm:$0xff]   ;;  %v686_v8 = vld [vmem:[#allocation5 + $0x30] sm:$0xff]   ;;  %v681_v9 = vld [vmem:[#allocation2 + $0x18] sm:$0xff]   ;;  %v199_v19 = vand.u32 127, %v198_v18 }
  0x36   : > { %606 = vmatprep.mubr.msk.bf16.mxu1 %vm825_vm0, %v824_v1  ;;  %571 = vmatpush3.bf16.msra.mxu0 %v677_v3  ;;  %v687_v10 = vld [vmem:[#allocation5 + $0x28] sm:$0xff]   ;;  %v682_v11 = vld [vmem:[#allocation2 + $0x10] sm:$0xff]   ;;  %v688_v12 = vld [vmem:[#allocation5 + $0x20] sm:$0xff]   ;;  %s189_s25 = sand.u32 1, %s809_s13   ;;  %s549_s27 = sshll.u32 %s869_s16, 7 }
  0x37   : > { %s528_s17 = sshll.u32 %s193_s11, 3  ;;  %572 = vmatprep.subr.bf16.mxu0 %v824_v1  ;;  %591 = vmatpush3.bf16.msra.mxu1 %v685_v6  ;;  %v683_v13 = vld [vmem:[#allocation2 + $0x8] sm:$0xff]   ;;  %v689_v14 = vld [vmem:[#allocation5 + $0x18] sm:$0xff]   ;;  %v684_v15 = vld [vmem:[#allocation2] sm:$0xff]   ;;  %s527_s26 = sshll.u32 %s189_s25, 3 }
  0x38   : > { %s195_s24 = scalar_lea.vmem %s976_s0, %s528_s17  ;;  %592 = vmatprep.subr.bf16.mxu1 %v824_v1  ;;  %v690_v16 = vld [vmem:[#allocation5 + $0x10] sm:$0xff]   ;;  %v691_v17 = vld [vmem:[#allocation5 + $0x8] sm:$0xff]   ;;  %v692_v22 = vld [vmem:[#allocation5] sm:$0xff]   ;;  %s191_s28 = scalar_lea.vmem [#allocation7], %s527_s26 }
  0x39   : > { %v197_v2 = vld [vmem:[%s195_s24] sm:$0xff]  ;;  %s438_s29 = sshll.u32 %s191_s28, 4  ;;  %s436_s5 = scalar_lea.hbm %s979_s3, %s549_s27  ;;  %s439_s29 = int_to_ptr.vmem [resolvable:$true] %s438_s29 }
  0x3a   : > { %201 = vperm.xlu0 %676, %v197_v2   ;;  %573 = vmatpush3.bf16.msra.mxu0 %v678_v4  ;;  %s425_s6 = scalar_lea.sflag [#allocation4], %s189_s25  ;;  %s749_s7 = scalar_lea.vmem %s439_s29, 128 }
  0x3b   : > { %574 = vmatprep.subr.bf16.mxu0 %v824_v1  ;;  %593 = vmatpush3.bf16.msra.mxu1 %v686_v8  ;;  %p750_p10 = scmp.ne.s32.totalorder %s439_s29, %s749_s7  ;;  %s827_s8 = smov [#allocation7]  }
  0x3c   : > { %594 = vmatprep.subr.bf16.mxu1 %v824_v1  ;;  %s753_s9 = sshll.u32 %s827_s8, 4  ;;  %s754_s9 = int_to_ptr.vmem [resolvable:$false] %s753_s9 }
  0x3d   : > { %p751_p12 = pnand %p750_p10, %p886_p5  ;;  %s755_s16 = scalar_lea.vmem %s754_s9, 256 }
  0x3e   : > { %575 = vmatpush3.bf16.msra.mxu0 %v679_v5  ;;  %p756_p11 = scmp.lt.s32.totalorder %s439_s29, %s754_s9  ;;  %p757_p0 = scmp.lt.s32.totalorder %s755_s16, %s749_s7 }
  0x3f   : > { %576 = vmatprep.subr.bf16.mxu0 %v824_v1  ;;  %595 = vmatpush3.bf16.msra.mxu1 %v687_v10  ;;  %p752_p8 = pneg %p751_p12 }
  0x40   : > { %596 = vmatprep.subr.bf16.mxu1 %v824_v1  ;;  %p758_p1 = por %p757_p0, %p756_p11 }
  0x42   : > { %577 = vmatpush3.bf16.msra.mxu0 %v680_v7  ;;  %p759_p3 = pnand %p758_p1, %p752_p8 }
  0x43   : > { %578 = vmatprep.subr.bf16.mxu0 %v824_v1  ;;  %597 = vmatpush3.bf16.msra.mxu1 %v688_v12 }
  0x44   : > { %598 = vmatprep.subr.bf16.mxu1 %v824_v1 }
  0x46   : > { %579 = vmatpush3.bf16.msra.mxu0 %v681_v9 }
  0x47   : > { %580 = vmatprep.subr.bf16.mxu0 %v824_v1  ;;  %599 = vmatpush3.bf16.msra.mxu1 %v689_v14 }
  0x48   : > { %600 = vmatprep.subr.bf16.mxu1 %v824_v1 }
  0x4a   : > { %581 = vmatpush3.bf16.msra.mxu0 %v682_v11 }
  0x4b   : > { %582 = vmatprep.subr.bf16.mxu0 %v824_v1  ;;  %601 = vmatpush3.bf16.msra.mxu1 %v690_v16 }
  0x4c   : > { %602 = vmatprep.subr.bf16.mxu1 %v824_v1 }
  0x4e   : > { %583 = vmatpush3.bf16.msra.mxu0 %v683_v13 }
  0x4f   : > { %584 = vmatprep.subr.bf16.mxu0 %v824_v1  ;;  %603 = vmatpush3.bf16.msra.mxu1 %v691_v17 }
  0x50   : > { %604 = vmatprep.subr.bf16.mxu1 %v824_v1 }
  0x52   : > { %585 = vmatpush3.bf16.msra.mxu0 %v684_v15 }
  0x53   : > { %605 = vmatpush3.bf16.msra.mxu1 %v692_v22 }
  0xb5   : > { %v202_v20 = vpop.permute.xlu0 %201 }
  0xb6   : > { %vm203_vm1 = vcmp.eq.s32.totalorder %v199_v19, %v202_v20 }
  0xb7   : > { %vm538_vm2 = vmpackc.low %vm203_vm1, %vm203_vm1 }
  0xb8   : > { %587 = vmatmul.mubr.msk.bf16.vlgmr.msra.gmra.mxu0 %vm538_vm2, %v826_v21 }
 0x178   : > { %v305_v23 = vpop.f32.mrf.mxu0 }
 0x179   : > { %v311_v24 = vpack.c.bf16 %v305_v23, %v305_v23 }
 0x17a   : > { %v588_v25 = vpop.f32.mrf.mxu0 }
 0x17b   : > { %607 = vmatmul.mubr.bf16.vlgmr.msra.gmra.mxu1 %v311_v24 }
 0x17c   : > { %v308_v26 = vpop.f32.mrf.mxu0 }
 0x17e   : > { %v589_v27 = vpop.f32.mrf.mxu0 }
 0x23b   : > { %v410_v28 = vpop.f32.mrf.mxu1 }
 0x23c   : > { %693 = vtanh.f32 %v410_v28 }
 0x23d   : > { %v608_v29 = vpop.f32.mrf.mxu1 }
 0x23f   : > { %v413_v30 = vpop.f32.mrf.mxu1 }
 0x241   : > { %v609_v31 = vpop.f32.mrf.mxu1 }
 0x249   : > { %v694_v32 = vpop.eup %693 }
 0x24a   : > { %v417_v33 = vmul.f32 %v694_v32, %v694_v32 }
 0x24c   : > { %418 = vadd.xlane.f32.xlu0 %v417_v33 }
 0x2d5   : > { %v419_v34 = vpop.xlane.xlu0 %418 }
 0x2d6   : > { %v420_v35 = vmax.f32 %v419_v34, 1e-24 }
 0x2d8   : > { %695 = vrsqrt.f32 %v420_v35 }
 0x2e5   : > { %v696_v36 = vpop.eup %695 }
 0x2e6   : > { %v422_v37 = vmul.f32 %v696_v36, %v694_v32 }
 0x2e8   : > { %423 = vst [vmem:[%s191_s28] sm:$0xff] %v422_v37 }
 0x2e9   : > { %762 = shalt.err (!%p759_p3)
}
 0x2ea   : > { %s763_s10 = scalar_lea.hbm %s436_s5, 128  ;;  %s767_s19 = scalar_lea.hbm %s979_s3, 256 }
 0x2eb   : > { %p764_p2 = scmp.ne.s32.totalorder %s436_s5, %s763_s10  ;;  %p768_p7 = scmp.lt.s32.totalorder %s436_s5, %s979_s3 }
 0x2ec   : > { %p769_p6 = scmp.lt.s32.totalorder %s767_s19, %s763_s10 }
 0x2ed   : > { %p765_p4 = pnand %p764_p2, %p886_p5 }
 0x2ee   : > { %p770_p9 = por %p769_p6, %p768_p7 }
 0x2ef   : > { %p766_p13 = pneg %p765_p4 }
 0x2f1   : > { %p771_p10 = pnand %p770_p9, %p766_p13 }
 0x2f3   : > { %774 = shalt.err (!%p771_p10)
}
 0x2f4   : > { %618 = dma.vmem_to_hbm [thread:$0]  (%p886_p5), %s439_s29, 128, %s436_s5, %s425_s6  }
 0x2f5 PF: > { %p635_p12 = scmp.ge.s32.totalorder %s817_s15, 2  ;;  %s450_s25 = sand.u32 1, %s805_s12  }
 0x2f6   : > { %p989_p8 = scmp.ne.s32.totalorder %s982_s23, 0  ;;  %s451_s26 = scalar_lea.sflag [#allocation4], %s450_s25 }
 0x2f8   : > { %p628_p11 = pnand %p635_p12, %p989_p8 }
 0x2fa   : > { %p629_p0 = pneg %p628_p11 }
 0x2fc   : > { %800 = dma.done.wait (%p629_p0), %s451_s26, 128  }
 0x2fd   : > { %802 = vsyncadd (%p629_p0), %s451_s26, 4294967168  ;;  %p15_p1 = scmp.ge.s32.totalorder %s873_s18, 4   ;;  %s990_s12 = smov %s809_s13 }
 0x2fe   : > { %s991_s13 = smov %s813_s14  ;;  %s992_s14 = smov %s884_s21 }
 0x2ff   : > { %s993_s15 = smov %s873_s18  ;;  %17 = sbr.rel (!%p15_p1) target bundleno = 5 (0x5), region = 76 }
 0x304   :  { %456 = vsyncpa [#allocation3], 1 }
 0x305   :  { %458 = vsyncpa [#allocation3 + $0x1], 1 }
 0x306   :  { %459 = vsyncpa [#allocation6], 1 }
 0x307   :  { %460 = vsyncpa [#allocation4], 1 }
 0x308   :  { %462 = vsyncpa [#allocation4 + $0x1], 1 }

</bundles_post_ra>
